<compile_context>
chip_gen: v5e
topology: v5e:2x2
jax: 0.10.0
libtpu: 0.0.40
codegen_flags: <defaults>
</compile_context>

<pallas_src>
import jax
import jax.numpy as jnp
from jax.experimental import pallas as pl
from jax.experimental.pallas import tpu as pltpu

# ----------------------------- model hyperparameters -----------------------------
INPUT_DIM = 64
HIDDEN_DIM = 32
OUTPUT_DIM = 10
OUT_PAD = 16           # padded classifier width (full-array last dim in the BlockSpec)
LAMB = 1.0             # lateral-inhibition exponent (heb_lr / eps only affect training)
DEFAULT_BATCH_TILE = 4096


def _round_up(n, m):
    return ((n + m - 1) // m) * m


def _relu_pow(a):
    """a >= 0 elementwise; computes a**LAMB without jnp.power when possible."""
    if LAMB == 1.0:
        return a
    if float(LAMB).is_integer() and LAMB >= 1:
        r = a
        for _ in range(int(LAMB) - 1):
            r = r * a
        return r
    # TODO(synk): non-integer lamb falls back to jnp.power (exp/log on the EUP).
    return jnp.power(a, LAMB)


def _inv_abs_pow(m):
    """Scalar 1 / |m|**LAMB.  An all-zero activation tensor gives 1/0 = inf,
    which mirrors the PyTorch reference behaviour (documented, not guarded)."""
    d = jnp.abs(m)
    if LAMB == 1.0:
        pass
    elif float(LAMB).is_integer() and LAMB >= 1:
        base = d
        for _ in range(int(LAMB) - 1):
            d = d * base
    else:
        d = d ** LAMB
    return 1.0 / d


def _make_kernel(true_batch, tile, n_tiles, needs_mask):
    def kernel(x_ref, w1_ref, b1_ref, w2_ref, b2_ref, out_ref, m_ref, a1_cache):
        p = pl.program_id(0)   # phase: 0 -> cache a1 + m1, 1 -> m2, 2 -> output
        t = pl.program_id(1)   # batch tile

        @pl.when((p == 0) & (t == 0))
        def _():
            # relu(.) >= 0, so 0 is the identity for the running max.
            m_ref[0] = jnp.float32(0.0)
            m_ref[1] = jnp.float32(0.0)

        def update_running_max(slot, act):
            """Fold this tile's max into the carried global max.  Padded batch
            rows (only possible in the last tile) are masked out; full tiles
            skip the iota/compare/select entirely."""
            if needs_mask:
                @pl.when(t == n_tiles - 1)
                def _():
                    row = t * tile + jax.lax.broadcasted_iota(jnp.int32, (tile, 1), 0)
                    masked = jnp.where(row < true_batch, act, 0.0)
                    m_ref[slot] = jnp.maximum(m_ref[slot], jnp.max(masked))

                @pl.when(t < n_tiles - 1)
                def _():
                    m_ref[slot] = jnp.maximum(m_ref[slot], jnp.max(act))
            else:
                m_ref[slot] = jnp.maximum(m_ref[slot], jnp.max(act))

        def classifier_relu():
            """relu((a1**lamb / m1**lamb) @ w2 + b2) from the VMEM a1 cache.
            The scalar 1/m1**lamb commutes through the matmul, so it is folded
            into the small resident [HIDDEN, OUT_PAD] w2 tile once per step."""
            a1 = a1_cache[t]                                    # [tile, HIDDEN]
            w2s = w2_ref[...] * _inv_abs_pow(m_ref[0])          # [HIDDEN, OUT_PAD]
            z2 = jnp.dot(_relu_pow(a1), w2s,
                         preferred_element_type=jnp.float32) + b2_ref[...]
            return jnp.maximum(z2, 0.0)                         # [tile, OUT_PAD]

        # ---- phase 0: layer-1 matmul (once per tile), cache a1, global m1 ----
        @pl.when(p == 0)
        def _():
            z1 = jnp.dot(x_ref[...], w1_ref[...],
                         preferred_element_type=jnp.float32) + b1_ref[...]
            a1 = jnp.maximum(z1, 0.0)                           # [tile, HIDDEN]
            a1_cache[t] = a1
            update_running_max(0, a1)

        # ---- phase 1: classifier activations from the cache, global m2 ----
        @pl.when(p == 1)
        def _():
            update_running_max(1, classifier_relu())

        # ---- phase 2: normalized output, single HBM writeback per tile ----
        @pl.when(p == 2)
        def _():
            out_ref[...] = (_relu_pow(classifier_relu())
                            * _inv_abs_pow(m_ref[1])).astype(out_ref.dtype)

    return kernel


def hebbian_network_forward(x, w1, b1, w2, b2, *, batch_tile=DEFAULT_BATCH_TILE):
    """x: [B, INPUT_DIM]; w1: [INPUT_DIM, HIDDEN_DIM]; b1: [1, HIDDEN_DIM];
       w2: [HIDDEN_DIM, OUTPUT_DIM]; b2: [1, OUTPUT_DIM] -> [B, OUTPUT_DIM]."""
    B = x.shape[0]
    assert x.shape[1] == INPUT_DIM
    assert w1.shape == (INPUT_DIM, HIDDEN_DIM) and w2.shape == (HIDDEN_DIM, OUTPUT_DIM)

    tile = _round_up(min(batch_tile, _round_up(B, 8)), 8)   # f32 sublane multiple
    b_pad = _round_up(B, tile)
    n_tiles = b_pad // tile
    needs_mask = b_pad != B

    x_p = jnp.pad(x, ((0, b_pad - B), (0, 0))) if needs_mask else x
    # Zero-padded classifier columns give relu(0) = 0 and never change the max.
    w2_p = jnp.pad(w2, ((0, 0), (0, OUT_PAD - OUTPUT_DIM)))
    b2_p = jnp.pad(b2, ((0, 0), (0, OUT_PAD - OUTPUT_DIM)))

    # Single pass over x, single pass over the output.
    flops = b_pad * (2 * INPUT_DIM * HIDDEN_DIM + 2 * 2 * HIDDEN_DIM * OUT_PAD)
    bytes_accessed = (b_pad * INPUT_DIM * 4 + b_pad * OUT_PAD * 4
                      + 4 * (INPUT_DIM * HIDDEN_DIM + HIDDEN_DIM
                             + HIDDEN_DIM * OUT_PAD + OUT_PAD))

    # VMEM budget: a1 cache (lanes padded 32->128), double-buffered x / out
    # blocks, resident weights.  Clipped below v7x's 64 MiB physical VMEM.
    LANE = 128
    est_vmem = (n_tiles * tile * LANE * 4            # a1 cache
                + 2 * tile * INPUT_DIM * 4           # x double buffer
                + 2 * tile * LANE * 4                # out double buffer (lane padded)
                + 4 * (INPUT_DIM + HIDDEN_DIM + 2) * LANE * 4)
    vmem_limit = int(min(max(est_vmem + (8 << 20), 32 << 20), 56 << 20))

    grid_spec = pltpu.PrefetchScalarGridSpec(
        num_scalar_prefetch=0,
        grid=(3, n_tiles),
        in_specs=[
            # x: streamed over batch tiles in phase 0, frozen at the last block
            # afterwards (phases 1/2 never read it -> no extra DMA).
            pl.BlockSpec((tile, INPUT_DIM),
                         lambda p, t: (t * (p == 0) + (n_tiles - 1) * (p > 0), 0)),
            pl.BlockSpec((INPUT_DIM, HIDDEN_DIM), lambda p, t: (0, 0)),  # w1 resident
            pl.BlockSpec((1, HIDDEN_DIM), lambda p, t: (0, 0)),          # b1 resident
            pl.BlockSpec((HIDDEN_DIM, OUT_PAD), lambda p, t: (0, 0)),    # w2 resident
            pl.BlockSpec((1, OUT_PAD), lambda p, t: (0, 0)),             # b2 resident
        ],
        # Output block index stays at 0 during phases 0/1 (never flushed, never
        # written) and only walks the batch tiles in phase 2 -> exactly one HBM
        # writeback per output block.
        out_specs=pl.BlockSpec((tile, OUT_PAD), lambda p, t: (t * (p == 2), 0)),
        scratch_shapes=[
            pltpu.SMEM((2,), jnp.float32),                          # carried [m1, m2]
            pltpu.VMEM((n_tiles, tile, HIDDEN_DIM), jnp.float32),   # a1 cache
        ],
    )

    out_padded = pl.pallas_call(
        _make_kernel(B, tile, n_tiles, needs_mask),
        out_shape=jax.ShapeDtypeStruct((b_pad, OUT_PAD), jnp.float32),
        grid_spec=grid_spec,
        compiler_params=pltpu.CompilerParams(
            # Both axes are sequential: the SMEM-carried global max couples
            # phases and batch tiles (the reference max is over the whole batch).
            dimension_semantics=("arbitrary", "arbitrary"),
            vmem_limit_bytes=vmem_limit),
        cost_estimate=pl.CostEstimate(flops=flops, transcendentals=0,
                                      bytes_accessed=bytes_accessed),
    )(x_p, w1, b1, w2_p, b2_p)

    return out_padded[:B, :OUTPUT_DIM]


def init_params(key):
    """Deterministic init mimicking nn.Linear's uniform(-1/sqrt(fan_in), 1/sqrt(fan_in))."""
    k1, k2, k3, k4 = jax.random.split(key, 4)
    s1 = 1.0 / jnp.sqrt(INPUT_DIM)
    s2 = 1.0 / jnp.sqrt(HIDDEN_DIM)
    w1 = jax.random.uniform(k1, (INPUT_DIM, HIDDEN_DIM), jnp.float32, -s1, s1)
    b1 = jax.random.uniform(k2, (1, HIDDEN_DIM), jnp.float32, -s1, s1)
    w2 = jax.random.uniform(k3, (HIDDEN_DIM, OUTPUT_DIM), jnp.float32, -s2, s2)
    b2 = jax.random.uniform(k4, (1, OUTPUT_DIM), jnp.float32, -s2, s2)
    return w1, b1, w2, b2


def reference_forward(x, w1, b1, w2, b2):
    def inhib(z):
        a = jnp.maximum(z, 0.0)
        m = jnp.max(a)
        return (a ** LAMB) / (jnp.abs(m) ** LAMB)
    h = inhib(x @ w1 + b1)
    return inhib(h @ w2 + b2)


if __name__ == "__main__":
    key = jax.random.PRNGKey(0)
    kx, kp = jax.random.split(key)
    B = 200
    x = jax.random.normal(kx, (B, INPUT_DIM), jnp.float32)
    w1, b1, w2, b2 = init_params(kp)

    ref = reference_forward(x, w1, b1, w2, b2)

    # single-tile path (whole batch in one block, weights resident)
    out1 = jax.block_until_ready(hebbian_network_forward(x, w1, b1, w2, b2))
    # multi-tile path (carried global max across batch tiles + last-tile masking)
    out2 = jax.block_until_ready(
        hebbian_network_forward(x, w1, b1, w2, b2, batch_tile=64))

    assert out1.shape == (B, OUTPUT_DIM)
    assert out2.shape == (B, OUTPUT_DIM)
    assert jnp.allclose(out1, ref, atol=1e-4, rtol=1e-4)
    assert jnp.allclose(out2, ref, atol=1e-4, rtol=1e-4)
    print("KERNEL_OK")
</pallas_src>

<mosaic_0001>
module attributes {stable_mosaic.version = 11 : i64} {
  func.func @kernel(%arg0: i32, %arg1: i32, %arg2: memref<200x64xf32, #tpu.memory_space<vmem>>, %arg3: memref<64x32xf32, #tpu.memory_space<vmem>>, %arg4: memref<1x32xf32, #tpu.memory_space<vmem>>, %arg5: memref<32x16xf32, #tpu.memory_space<vmem>>, %arg6: memref<1x16xf32, #tpu.memory_space<vmem>>, %arg7: memref<200x16xf32, #tpu.memory_space<vmem>>, %arg8: memref<2xf32, #tpu.memory_space<smem>>, %arg9: memref<1x200x32xf32, #tpu.memory_space<vmem>>) attributes {dimension_semantics = [#tpu.dimension_semantics<arbitrary>, #tpu.dimension_semantics<arbitrary>], iteration_bounds = array<i64: 3, 1>, scalar_prefetch = 0 : i64, scratch_operands = 2 : i64, tpu.core_type = #tpu.core_type<tc>, window_params = [{transform_indices = @transform_0, window_bounds = array<i64: 200, 64>}, {pipeline_mode = #tpu.pipeline_mode<synchronous>, transform_indices = @transform_1, window_bounds = array<i64: 64, 32>}, {pipeline_mode = #tpu.pipeline_mode<synchronous>, transform_indices = @transform_2, window_bounds = array<i64: 1, 32>}, {pipeline_mode = #tpu.pipeline_mode<synchronous>, transform_indices = @transform_3, window_bounds = array<i64: 32, 16>}, {pipeline_mode = #tpu.pipeline_mode<synchronous>, transform_indices = @transform_4, window_bounds = array<i64: 1, 16>}, {transform_indices = @transform_5, window_bounds = array<i64: 200, 16>}]} {
    %c0_i32 = arith.constant 0 : i32
    %0 = arith.cmpi eq, %arg0, %c0_i32 : i32
    %c0_i32_0 = arith.constant 0 : i32
    %1 = arith.cmpi eq, %arg1, %c0_i32_0 : i32
    %2 = arith.andi %0, %1 : i1
    %3 = arith.extui %2 : i1 to i32
    %c0_i32_1 = arith.constant 0 : i32
    %4 = arith.cmpi ne, %3, %c0_i32_1 : i32
    scf.if %4 {
      %cst = arith.constant 0.000000e+00 : f32
      %c0 = arith.constant 0 : index
      %14 = memref.load %arg8[%c0] : memref<2xf32, #tpu.memory_space<smem>>
      memref.store %cst, %arg8[%c0] : memref<2xf32, #tpu.memory_space<smem>>
      %cst_6 = arith.constant 0.000000e+00 : f32
      %c1 = arith.constant 1 : index
      %15 = memref.load %arg8[%c1] : memref<2xf32, #tpu.memory_space<smem>>
      memref.store %cst_6, %arg8[%c1] : memref<2xf32, #tpu.memory_space<smem>>
    } else {
    }
    %c0_i32_2 = arith.constant 0 : i32
    %5 = arith.cmpi eq, %arg0, %c0_i32_2 : i32
    %6 = arith.extui %5 : i1 to i32
    %c0_i32_3 = arith.constant 0 : i32
    %7 = arith.cmpi ne, %6, %c0_i32_3 : i32
    scf.if %7 {
      %c0 = arith.constant 0 : index
      %c0_6 = arith.constant 0 : index
      %14 = vector.load %arg2[%c0, %c0_6] : memref<200x64xf32, #tpu.memory_space<vmem>>, vector<200x64xf32>
      %c0_7 = arith.constant 0 : index
      %c0_8 = arith.constant 0 : index
      %15 = vector.load %arg3[%c0_7, %c0_8] : memref<64x32xf32, #tpu.memory_space<vmem>>, vector<64x32xf32>
      %cst = arith.constant dense<0.000000e+00> : vector<200x32xf32>
      %16 = tpu.matmul %14, %15, %cst {dimension_numbers = #tpu.dot_dimension_numbers<[1], [0], [0], [1], [0, 0, 1, 1], [], []>} : vector<200x64xf32>, vector<64x32xf32>, vector<200x32xf32> -> vector<200x32xf32>
      %c0_9 = arith.constant 0 : index
      %c0_10 = arith.constant 0 : index
      %17 = vector.load %arg4[%c0_9, %c0_10] : memref<1x32xf32, #tpu.memory_space<vmem>>, vector<1x32xf32>
      %18 = vector.broadcast %17 : vector<1x32xf32> to vector<200x32xf32>
      %19 = arith.addf %16, %18 : vector<200x32xf32>
      %cst_11 = arith.constant 0.000000e+00 : f32
      %20 = vector.broadcast %cst_11 : f32 to vector<200x32xf32>
      %21 = arith.maximumf %19, %20 : vector<200x32xf32>
      %22 = arith.index_cast %arg1 : i32 to index
      %c0_12 = arith.constant 0 : index
      %c0_13 = arith.constant 0 : index
      %23 = vector.load %arg9[%22, %c0_12, %c0_13] : memref<1x200x32xf32, #tpu.memory_space<vmem>>, vector<1x200x32xf32>
      %24 = vector.shape_cast %23 : vector<1x200x32xf32> to vector<200x32xf32>
      %25 = vector.shape_cast %21 : vector<200x32xf32> to vector<1x200x32xf32>
      tpu.vector_store %arg9[%22, %c0_12, %c0_13], %25 {strides = array<i32>} : memref<1x200x32xf32, #tpu.memory_space<vmem>>, vector<1x200x32xf32>,
      %c0_14 = arith.constant 0 : index
      %26 = memref.load %arg8[%c0_14] : memref<2xf32, #tpu.memory_space<smem>>
      %27 = vector.shape_cast %21 : vector<200x32xf32> to vector<1x200x32xf32>
      %cst_15 = arith.constant dense<0xFF800000> : vector<1xf32>
      %28 = vector.multi_reduction <maximumf>, %27, %cst_15 [1, 2] : vector<1x200x32xf32> to vector<1xf32>
      %29 = vector.shape_cast %28 : vector<1xf32> to vector<1x1x1xf32>
      %30 = vector.extract %29[0, 0, 0] : f32 from vector<1x1x1xf32>
      %31 = arith.maximumf %26, %30 : f32
      %c0_16 = arith.constant 0 : index
      %32 = memref.load %arg8[%c0_16] : memref<2xf32, #tpu.memory_space<smem>>
      memref.store %31, %arg8[%c0_16] : memref<2xf32, #tpu.memory_space<smem>>
    } else {
    }
    %c1_i32 = arith.constant 1 : i32
    %8 = arith.cmpi eq, %arg0, %c1_i32 : i32
    %9 = arith.extui %8 : i1 to i32
    %c0_i32_4 = arith.constant 0 : i32
    %10 = arith.cmpi ne, %9, %c0_i32_4 : i32
    scf.if %10 {
      %14 = arith.index_cast %arg1 : i32 to index
      %c0 = arith.constant 0 : index
      %c0_6 = arith.constant 0 : index
      %15 = vector.load %arg9[%14, %c0, %c0_6] : memref<1x200x32xf32, #tpu.memory_space<vmem>>, vector<1x200x32xf32>
      %16 = vector.shape_cast %15 : vector<1x200x32xf32> to vector<200x32xf32>
      %c0_7 = arith.constant 0 : index
      %c0_8 = arith.constant 0 : index
      %17 = vector.load %arg5[%c0_7, %c0_8] : memref<32x16xf32, #tpu.memory_space<vmem>>, vector<32x16xf32>
      %c0_9 = arith.constant 0 : index
      %18 = memref.load %arg8[%c0_9] : memref<2xf32, #tpu.memory_space<smem>>
      %19 = math.absf %18 : f32
      %cst = arith.constant 1.000000e+00 : f32
      %20 = arith.divf %cst, %19 : f32
      %21 = vector.broadcast %20 : f32 to vector<32x16xf32>
      %22 = arith.mulf %17, %21 : vector<32x16xf32>
      %cst_10 = arith.constant dense<0.000000e+00> : vector<200x16xf32>
      %23 = tpu.matmul %16, %22, %cst_10 {dimension_numbers = #tpu.dot_dimension_numbers<[1], [0], [0], [1], [0, 0, 1, 1], [], []>} : vector<200x32xf32>, vector<32x16xf32>, vector<200x16xf32> -> vector<200x16xf32>
      %c0_11 = arith.constant 0 : index
      %c0_12 = arith.constant 0 : index
      %24 = vector.load %arg6[%c0_11, %c0_12] : memref<1x16xf32, #tpu.memory_space<vmem>>, vector<1x16xf32>
      %25 = vector.broadcast %24 : vector<1x16xf32> to vector<200x16xf32>
      %26 = arith.addf %23, %25 : vector<200x16xf32>
      %cst_13 = arith.constant 0.000000e+00 : f32
      %27 = vector.broadcast %cst_13 : f32 to vector<200x16xf32>
      %28 = arith.maximumf %26, %27 : vector<200x16xf32>
      %c1 = arith.constant 1 : index
      %29 = memref.load %arg8[%c1] : memref<2xf32, #tpu.memory_space<smem>>
      %30 = vector.shape_cast %28 : vector<200x16xf32> to vector<1x200x16xf32>
      %cst_14 = arith.constant dense<0xFF800000> : vector<1xf32>
      %31 = vector.multi_reduction <maximumf>, %30, %cst_14 [1, 2] : vector<1x200x16xf32> to vector<1xf32>
      %32 = vector.shape_cast %31 : vector<1xf32> to vector<1x1x1xf32>
      %33 = vector.extract %32[0, 0, 0] : f32 from vector<1x1x1xf32>
      %34 = arith.maximumf %29, %33 : f32
      %c1_15 = arith.constant 1 : index
      %35 = memref.load %arg8[%c1_15] : memref<2xf32, #tpu.memory_space<smem>>
      memref.store %34, %arg8[%c1_15] : memref<2xf32, #tpu.memory_space<smem>>
    } else {
    }
    %c2_i32 = arith.constant 2 : i32
    %11 = arith.cmpi eq, %arg0, %c2_i32 : i32
    %12 = arith.extui %11 : i1 to i32
    %c0_i32_5 = arith.constant 0 : i32
    %13 = arith.cmpi ne, %12, %c0_i32_5 : i32
    scf.if %13 {
      %14 = arith.index_cast %arg1 : i32 to index
      %c0 = arith.constant 0 : index
      %c0_6 = arith.constant 0 : index
      %15 = vector.load %arg9[%14, %c0, %c0_6] : memref<1x200x32xf32, #tpu.memory_space<vmem>>, vector<1x200x32xf32>
      %16 = vector.shape_cast %15 : vector<1x200x32xf32> to vector<200x32xf32>
      %c0_7 = arith.constant 0 : index
      %c0_8 = arith.constant 0 : index
      %17 = vector.load %arg5[%c0_7, %c0_8] : memref<32x16xf32, #tpu.memory_space<vmem>>, vector<32x16xf32>
      %c0_9 = arith.constant 0 : index
      %18 = memref.load %arg8[%c0_9] : memref<2xf32, #tpu.memory_space<smem>>
      %19 = math.absf %18 : f32
      %cst = arith.constant 1.000000e+00 : f32
      %20 = arith.divf %cst, %19 : f32
      %21 = vector.broadcast %20 : f32 to vector<32x16xf32>
      %22 = arith.mulf %17, %21 : vector<32x16xf32>
      %cst_10 = arith.constant dense<0.000000e+00> : vector<200x16xf32>
      %23 = tpu.matmul %16, %22, %cst_10 {dimension_numbers = #tpu.dot_dimension_numbers<[1], [0], [0], [1], [0, 0, 1, 1], [], []>} : vector<200x32xf32>, vector<32x16xf32>, vector<200x16xf32> -> vector<200x16xf32>
      %c0_11 = arith.constant 0 : index
      %c0_12 = arith.constant 0 : index
      %24 = vector.load %arg6[%c0_11, %c0_12] : memref<1x16xf32, #tpu.memory_space<vmem>>, vector<1x16xf32>
      %25 = vector.broadcast %24 : vector<1x16xf32> to vector<200x16xf32>
      %26 = arith.addf %23, %25 : vector<200x16xf32>
      %cst_13 = arith.constant 0.000000e+00 : f32
      %27 = vector.broadcast %cst_13 : f32 to vector<200x16xf32>
      %28 = arith.maximumf %26, %27 : vector<200x16xf32>
      %c1 = arith.constant 1 : index
      %29 = memref.load %arg8[%c1] : memref<2xf32, #tpu.memory_space<smem>>
      %30 = math.absf %29 : f32
      %cst_14 = arith.constant 1.000000e+00 : f32
      %31 = arith.divf %cst_14, %30 : f32
      %32 = vector.broadcast %31 : f32 to vector<200x16xf32>
      %33 = arith.mulf %28, %32 : vector<200x16xf32>
      %c0_15 = arith.constant 0 : index
      %c0_16 = arith.constant 0 : index
      %34 = vector.load %arg7[%c0_15, %c0_16] : memref<200x16xf32, #tpu.memory_space<vmem>>, vector<200x16xf32>
      tpu.vector_store %arg7[%c0_15, %c0_16], %33 {strides = array<i32>} : memref<200x16xf32, #tpu.memory_space<vmem>>, vector<200x16xf32>,
    } else {
    }
    return
  }
  func.func @transform_0(%arg0: i32, %arg1: i32) -> (i32, i32) {
    %c0_i32 = arith.constant 0 : i32
    %0 = arith.cmpi eq, %arg0, %c0_i32 : i32
    %1 = arith.extui %0 : i1 to i32
    %2 = arith.muli %arg1, %1 : i32
    %c0_i32_0 = arith.constant 0 : i32
    %3 = arith.cmpi sgt, %arg0, %c0_i32_0 : i32
    %4 = arith.extui %3 : i1 to i32
    %c0_i32_1 = arith.constant 0 : i32
    %5 = arith.muli %c0_i32_1, %4 : i32
    %6 = arith.addi %2, %5 : i32
    %c0_i32_2 = arith.constant 0 : i32
    %c0_i32_3 = arith.constant 0 : i32
    return %6, %c0_i32_2 : i32, i32
  }
  func.func @transform_1(%arg0: i32, %arg1: i32) -> (i32, i32) {
    %c0_i32 = arith.constant 0 : i32
    %c0_i32_0 = arith.constant 0 : i32
    %c0_i32_1 = arith.constant 0 : i32
    return %c0_i32, %c0_i32_0 : i32, i32
  }
  func.func @transform_2(%arg0: i32, %arg1: i32) -> (i32, i32) {
    %c0_i32 = arith.constant 0 : i32
    %c0_i32_0 = arith.constant 0 : i32
    %c0_i32_1 = arith.constant 0 : i32
    return %c0_i32, %c0_i32_0 : i32, i32
  }
  func.func @transform_3(%arg0: i32, %arg1: i32) -> (i32, i32) {
    %c0_i32 = arith.constant 0 : i32
    %c0_i32_0 = arith.constant 0 : i32
    %c0_i32_1 = arith.constant 0 : i32
    return %c0_i32, %c0_i32_0 : i32, i32
  }
  func.func @transform_4(%arg0: i32, %arg1: i32) -> (i32, i32) {
    %c0_i32 = arith.constant 0 : i32
    %c0_i32_0 = arith.constant 0 : i32
    %c0_i32_1 = arith.constant 0 : i32
    return %c0_i32, %c0_i32_0 : i32, i32
  }
  func.func @transform_5(%arg0: i32, %arg1: i32) -> (i32, i32) {
    %c2_i32 = arith.constant 2 : i32
    %0 = arith.cmpi eq, %arg0, %c2_i32 : i32
    %1 = arith.extui %0 : i1 to i32
    %2 = arith.muli %arg1, %1 : i32
    %c0_i32 = arith.constant 0 : i32
    %c0_i32_0 = arith.constant 0 : i32
    return %2, %c0_i32 : i32, i32
  }
}

</mosaic_0001>

<bundles_post_ra>
// kernel: tpu_custom_call.1
= control target key start
LH: loop header
LB: loop body
LE: loop exit
PB: predicated region body
PF: predicated region fallthrough
CT: control target
= control target key end

     0   :  { %s1573_s18 = smov 0   ;;  %s1575_s19 = smov 0   ;;  %s2195_s0 = inlined_call_operand.vmem [shape: f32[200,64], index: 0, kind: input, shape index: {}]   ;;  %s2196_s1 = inlined_call_operand.vmem [shape: f32[64,32], index: 1, kind: input, shape index: {}]   ;;  %s2197_s2 = inlined_call_operand.vmem [shape: f32[1,32], index: 2, kind: input, shape index: {}]   ;;  %s2198_s3 = inlined_call_operand.vmem [shape: f32[32,16], index: 3, kind: input, shape index: {}]   ;;  %s2199_s4 = inlined_call_operand.vmem [shape: f32[1,16], index: 4, kind: input, shape index: {}]   ;;  %s2200_s5 = inlined_call_operand.vmem [shape: f32[200,16], index: 5, kind: output, shape index: {}]  }
   0x1   :  { %s1577_s20 = smov 0  }
   0x2 LB: > { %s27_s21 = sadd.s32 1, %s1536_s19  ;;  %p1337_p0 = scmp.ge.s32.totalorder %s1540_s20, 1  ;;  %s1540_s20 = sphi %s1577_s20, %s15_s20   ;;  %s1536_s19 = sphi %s1575_s19, %s2202_s19   ;;  %s1532_s18 = sphi %s1573_s18, %s2201_s18  }
   0x3   : > { %p29_p1 = scmp.ge.s32.totalorder %s27_s21, 3  ;;  %p218_p2 = scmp.lt.s32.totalorder %s1540_s20, 4 }
   0x5   : > { %s2204_s21 = smov (%p29_p1, %s27_s21), 0  ;;  %p219_p3 = pnand %p1337_p0, %p218_p2 }
   0x6   : > { %p276_p4 = scmp.eq.s32.totalorder (!%p219_p3), %s1532_s18, 0  ;;  %s1542_s22 = smov (!%p219_p3), 0.0  }
   0x7   : > { %222 = sbr.rel (%p219_p3) target bundleno = 1143 (0x477), region = 40  ;;  %p1339_p5 = scmp.ne.s32.totalorder (!%p219_p3), %s1532_s18, 0 }
   0xc   : > { %1482 = sst [smem:[#allocation2]] (%p276_p4), %s1542_s22  ;;  %288 = sbr.rel (%p1339_p5) target bundleno = 408 (0x198), region = 48 }
   0xd   : > { %1483 = sst [smem:[#allocation2 + $0x1]] (%p276_p4), %s1542_s22 }
   0xe   : > { %s547_s28 = sld [smem:[#allocation2]] (!%p1339_p5) }
  0x11   : > { %v321_v0 = vld [vmem:[%s2196_s1 + $0x38] sm:$0xff]  ;;  %v320_v1 = vld [vmem:[%s2196_s1 + $0x30] sm:$0xff]  ;;  %v319_v2 = vld [vmem:[%s2196_s1 + $0x28] sm:$0xff]  ;;  %vm326_vm0 = vcmask 523264   ;;  %vm521_vm1 = vcmask 261120  }
  0x12   : > { %410 = vmatpush.msra.mxu0 %v321_v0  ;;  %1424 = vmatpush.msra.mxu1 %v321_v0  ;;  %v318_v3 = vld [vmem:[%s2196_s1 + $0x20] sm:$0xff]  ;;  %v317_v4 = vld [vmem:[%s2196_s1 + $0x18] sm:$0xff]  ;;  %v316_v5 = vld [vmem:[%s2196_s1 + $0x10] sm:$0xff] }
  0x13   : > { %1425 = vmatpush.msra.mxu2 %v321_v0  ;;  %1426 = vmatpush.msra.mxu3 %v321_v0  ;;  %v315_v6 = vld [vmem:[%s2196_s1 + $0x8] sm:$0xff]  ;;  %v314_v7 = vld [vmem:[%s2196_s1] sm:$0xff]  ;;  %v295_v9 = vld [vmem:[%s2195_s0 + $0x30] sm:$0xff] }
  0x14   : > { %411 = vmatpush.msra.mxu0 %v320_v1  ;;  %1427 = vmatpush.msra.mxu1 %v320_v1  ;;  %v289_v8 = vld [vmem:[%s2195_s0] sm:$0xff]  ;;  %v308_v11 = vld [vmem:[%s2195_s0 + $0x98] sm:$0xff]  ;;  %v290_v12 = vld [vmem:[%s2195_s0 + $0x8] sm:$0xff] }
  0x15   : > { %1428 = vmatpush.msra.mxu2 %v320_v1  ;;  %1429 = vmatpush.msra.mxu3 %v320_v1  ;;  %v301_v10 = vld [vmem:[%s2195_s0 + $0x60] sm:$0xff]  ;;  %v296_v13 = vld [vmem:[%s2195_s0 + $0x38] sm:$0xff]  ;;  %v302_v14 = vld [vmem:[%s2195_s0 + $0x68] sm:$0xff] }
  0x16   : > { %412 = vmatpush.msra.mxu0 %v319_v2  ;;  %1430 = vmatpush.msra.mxu1 %v319_v2  ;;  %v309_v15 = vld [vmem:[%s2195_s0 + $0xa0] sm:$0xff]  ;;  %v291_v16 = vld [vmem:[%s2195_s0 + $0x10] sm:$0xff]  ;;  %v310_v19 = vld [vmem:[%s2195_s0 + $0xa8] sm:$0xff] }
  0x17   : > { %1431 = vmatpush.msra.mxu2 %v319_v2  ;;  %1432 = vmatpush.msra.mxu3 %v319_v2  ;;  %v297_v17 = vld [vmem:[%s2195_s0 + $0x40] sm:$0xff]  ;;  %v303_v18 = vld [vmem:[%s2195_s0 + $0x70] sm:$0xff]  ;;  %v292_v20 = vld [vmem:[%s2195_s0 + $0x18] sm:$0xff] }
  0x18   : > { %413 = vmatpush.msra.mxu0 %v318_v3  ;;  %1433 = vmatpush.msra.mxu1 %v318_v3  ;;  %v298_v21 = vld [vmem:[%s2195_s0 + $0x48] sm:$0xff]  ;;  %v304_v22 = vld [vmem:[%s2195_s0 + $0x78] sm:$0xff]  ;;  %v311_v23 = vld [vmem:[%s2195_s0 + $0xb0] sm:$0xff] }
  0x19   : > { %1434 = vmatpush.msra.mxu2 %v318_v3  ;;  %1435 = vmatpush.msra.mxu3 %v318_v3  ;;  %v293_v24 = vld [vmem:[%s2195_s0 + $0x20] sm:$0xff]  ;;  %v299_v25 = vld [vmem:[%s2195_s0 + $0x50] sm:$0xff]  ;;  %v312_v27 = vld [vmem:[%s2195_s0 + $0xb8] sm:$0xff] }
  0x1a   : > { %414 = vmatpush.msra.mxu0 %v317_v4  ;;  %1436 = vmatpush.msra.mxu1 %v317_v4  ;;  %v305_v26 = vld [vmem:[%s2195_s0 + $0x80] sm:$0xff]  ;;  %v294_v28 = vld [vmem:[%s2195_s0 + $0x28] sm:$0xff]  ;;  %v300_v29 = vld [vmem:[%s2195_s0 + $0x58] sm:$0xff] }
  0x1b   : > { %1437 = vmatpush.msra.mxu2 %v317_v4  ;;  %1438 = vmatpush.msra.mxu3 %v317_v4  ;;  %v306_v30 = vld [vmem:[%s2195_s0 + $0x88] sm:$0xff]  ;;  %v313_v31 = vld [vmem:[%s2195_s0 + $0xc0] sm:$0xff]  ;;  %v307_v32 = vld [vmem:[%s2195_s0 + $0x90] sm:$0xff] }
  0x1c   : > { %415 = vmatpush.msra.mxu0 %v316_v5  ;;  %1439 = vmatpush.msra.mxu1 %v316_v5  ;;  %v1722_v33 = vld [vmem:[%s2197_s2] ss:$0 sm:$0xff] }
  0x1d   : > { %1440 = vmatpush.msra.mxu2 %v316_v5  ;;  %1441 = vmatpush.msra.mxu3 %v316_v5 }
  0x1e   : > { %416 = vmatpush.msra.mxu0 %v315_v6  ;;  %1442 = vmatpush.msra.mxu1 %v315_v6 }
  0x1f   : > { %1443 = vmatpush.msra.mxu2 %v315_v6  ;;  %1444 = vmatpush.msra.mxu3 %v315_v6 }
  0x20   : > { %417 = vmatpush.msra.mxu0 %v314_v7  ;;  %1445 = vmatpush.msra.mxu1 %v314_v7 }
  0x21   : > { %1446 = vmatpush.msra.mxu2 %v314_v7  ;;  %1447 = vmatpush.msra.mxu3 %v314_v7 }
  0x22   : > { %1340 = vmatmul.msk.f32.vlgmr.msra.gmra.mxu0 %vm326_vm0, %v289_v8  ;;  %1346 = vmatmul.msk.f32.vlgmr.msra.gmra.mxu1 %vm326_vm0, %v295_v9 }
  0x23   : > { %1352 = vmatmul.msk.f32.vlgmr.msra.gmra.mxu2 %vm326_vm0, %v301_v10  ;;  %1359 = vmatmul.msk.f32.vlgmr.msra.gmra.mxu3 %vm326_vm0, %v308_v11 }
  0x2a   : > { %1341 = vmatmul.msk.f32.gmra.mxu0 %vm326_vm0, %v290_v12  ;;  %1347 = vmatmul.msk.f32.gmra.mxu1 %vm326_vm0, %v296_v13 }
  0x2b   : > { %1353 = vmatmul.msk.f32.gmra.mxu2 %vm326_vm0, %v302_v14  ;;  %1360 = vmatmul.msk.f32.gmra.mxu3 %vm326_vm0, %v309_v15 }
  0x32   : > { %1342 = vmatmul.msk.f32.gmra.mxu0 %vm326_vm0, %v291_v16  ;;  %1348 = vmatmul.msk.f32.gmra.mxu1 %vm326_vm0, %v297_v17 }
  0x33   : > { %1354 = vmatmul.msk.f32.gmra.mxu2 %vm326_vm0, %v303_v18  ;;  %1361 = vmatmul.msk.f32.gmra.mxu3 %vm326_vm0, %v310_v19 }
  0x3a   : > { %1343 = vmatmul.msk.f32.gmra.mxu0 %vm326_vm0, %v292_v20  ;;  %1349 = vmatmul.msk.f32.gmra.mxu1 %vm326_vm0, %v298_v21 }
  0x3b   : > { %1355 = vmatmul.msk.f32.gmra.mxu2 %vm326_vm0, %v304_v22  ;;  %1362 = vmatmul.msk.f32.gmra.mxu3 %vm326_vm0, %v311_v23 }
  0x42   : > { %1344 = vmatmul.msk.f32.gmra.mxu0 %vm326_vm0, %v293_v24  ;;  %1350 = vmatmul.msk.f32.gmra.mxu1 %vm326_vm0, %v299_v25 }
  0x43   : > { %1356 = vmatmul.msk.f32.gmra.mxu2 %vm326_vm0, %v305_v26  ;;  %1363 = vmatmul.msk.f32.gmra.mxu3 %vm326_vm0, %v312_v27 }
  0x4a   : > { %1345 = vmatmul.msk.f32.gmra.mxu0 %vm326_vm0, %v294_v28  ;;  %1351 = vmatmul.msk.f32.gmra.mxu1 %vm326_vm0, %v300_v29 }
  0x4b   : > { %1357 = vmatmul.msk.f32.gmra.mxu2 %vm326_vm0, %v306_v30  ;;  %1364 = vmatmul.msk.f32.gmra.mxu3 %vm326_vm0, %v313_v31 }
  0x53   : > { %1358 = vmatmul.msk.f32.gmra.mxu2 %vm326_vm0, %v307_v32 }
  0x9f   : > { %v419_v34 = vpop.f32.mrf.mxu0  ;;  %v437_v35 = vpop.f32.mrf.mxu1 }
  0xa0   : > { %v1725_v36 = vadd.f32 %v1722_v33, %v419_v34  ;;  %v1728_v37 = vadd.f32 %v1722_v33, %v437_v35 }
  0xa2   : > { %v494_v38 = vmax.f32 %v1725_v36, 0.0  ;;  %v500_v39 = vmax.f32 %v1728_v37, 0.0 }
  0xa4   : > { %522 = vst.msk [vmem:[#allocation3] sm:$0xff] %vm521_vm1, %v494_v38 }
  0xa5   : > { %528 = vst.msk [vmem:[#allocation3 + $0x30] sm:$0xff] %vm521_vm1, %v500_v39 }
  0xa6   : > { %v455_v40 = vpop.f32.mrf.mxu2  ;;  %v476_v41 = vpop.f32.mrf.mxu3 }
  0xa7   : > { %v1739_v42 = vadd.f32 %v1722_v33, %v455_v40  ;;  %v1742_v43 = vadd.f32 %v1722_v33, %v476_v41  ;;  %v422_v44 = vpop.f32.mrf.mxu0  ;;  %v440_v45 = vpop.f32.mrf.mxu1  ;;  %v548_v41 = vsel %vm521_vm1, %v494_v38, -inf }
  0xa8   : > { %v1745_v46 = vadd.f32 %v1722_v33, %v422_v44  ;;  %v1748_v47 = vadd.f32 %v1722_v33, %v440_v45 }
  0xa9   : > { %v506_v48 = vmax.f32 %v1739_v42, 0.0  ;;  %v513_v49 = vmax.f32 %v1742_v43, 0.0 }
  0xaa   : > { %v495_v50 = vmax.f32 %v1745_v46, 0.0  ;;  %v501_v51 = vmax.f32 %v1748_v47, 0.0 }
  0xab   : > { %534 = vst.msk [vmem:[#allocation3 + $0x60] sm:$0xff] %vm521_vm1, %v506_v48 }
  0xac   : > { %541 = vst.msk [vmem:[#allocation3 + $0x98] sm:$0xff] %vm521_vm1, %v513_v49  ;;  %v549_v45 = vsel %vm521_vm1, %v495_v50, -inf  ;;  %v558_v36 = vsel %vm521_vm1, %v501_v51, -inf }
  0xad   : > { %523 = vst.msk [vmem:[#allocation3 + $0x8] sm:$0xff] %vm521_vm1, %v495_v50 }
  0xae   : > { %529 = vst.msk [vmem:[#allocation3 + $0x38] sm:$0xff] %vm521_vm1, %v501_v51  ;;  %v458_v52 = vpop.f32.mrf.mxu2  ;;  %v479_v53 = vpop.f32.mrf.mxu3 }
  0xaf   : > { %v1767_v54 = vadd.f32 %v1722_v33, %v458_v52  ;;  %v1770_v55 = vadd.f32 %v1722_v33, %v479_v53  ;;  %v425_v56 = vpop.f32.mrf.mxu0  ;;  %v443_v57 = vpop.f32.mrf.mxu1 }
  0xb0   : > { %v1773_v58 = vadd.f32 %v1722_v33, %v425_v56  ;;  %v1776_v59 = vadd.f32 %v1722_v33, %v443_v57 }
  0xb1   : > { %v507_v60 = vmax.f32 %v1767_v54, 0.0  ;;  %v514_v61 = vmax.f32 %v1770_v55, 0.0 }
  0xb2   : > { %v502_v62 = vmax.f32 %v1776_v59, 0.0  ;;  %v496_v63 = vmax.f32 %v1773_v58, 0.0 }
  0xb3   : > { %535 = vst.msk [vmem:[#allocation3 + $0x68] sm:$0xff] %vm521_vm1, %v507_v60 }
  0xb4   : > { %542 = vst.msk [vmem:[#allocation3 + $0xa0] sm:$0xff] %vm521_vm1, %v514_v61  ;;  %v560_v38 = vsel %vm521_vm1, %v502_v62, -inf  ;;  %v550_v47 = vsel %vm521_vm1, %v496_v63, -inf }
  0xb5   : > { %524 = vst.msk [vmem:[#allocation3 + $0x10] sm:$0xff] %vm521_vm1, %v496_v63 }
  0xb6   : > { %530 = vst.msk [vmem:[#allocation3 + $0x40] sm:$0xff] %vm521_vm1, %v502_v62  ;;  %v461_v0 = vpop.f32.mrf.mxu2  ;;  %v482_v1 = vpop.f32.mrf.mxu3 }
  0xb7   : > { %v1793_v2 = vadd.f32 %v1722_v33, %v461_v0  ;;  %v1796_v3 = vadd.f32 %v1722_v33, %v482_v1  ;;  %v428_v4 = vpop.f32.mrf.mxu0  ;;  %v446_v5 = vpop.f32.mrf.mxu1 }
  0xb8   : > { %v429_v6 = vadd.f32 %v1722_v33, %v428_v4  ;;  %v447_v7 = vadd.f32 %v1722_v33, %v446_v5 }
  0xb9   : > { %v508_v8 = vmax.f32 %v1793_v2, 0.0  ;;  %v515_v9 = vmax.f32 %v1796_v3, 0.0 }
  0xba   : > { %v503_v10 = vmax.f32 %v447_v7, 0.0  ;;  %v497_v11 = vmax.f32 %v429_v6, 0.0 }
  0xbb   : > { %536 = vst.msk [vmem:[#allocation3 + $0x70] sm:$0xff] %vm521_vm1, %v508_v8 }
  0xbc   : > { %543 = vst.msk [vmem:[#allocation3 + $0xa8] sm:$0xff] %vm521_vm1, %v515_v9  ;;  %v551_v56 = vsel %vm521_vm1, %v497_v11, -inf  ;;  %v562_v59 = vsel %vm521_vm1, %v503_v10, -inf }
  0xbd   : > { %525 = vst.msk [vmem:[#allocation3 + $0x18] sm:$0xff] %vm521_vm1, %v497_v11  ;;  %v559_v5 = vmax.f32 %v551_v56, %v558_v36 }
  0xbe   : > { %531 = vst.msk [vmem:[#allocation3 + $0x48] sm:$0xff] %vm521_vm1, %v503_v10  ;;  %v464_v12 = vpop.f32.mrf.mxu2  ;;  %v485_v13 = vpop.f32.mrf.mxu3  ;;  %v556_v10 = vsel %vm521_vm1, %v500_v39, -inf }
  0xbf   : > { %v465_v14 = vadd.f32 %v1722_v33, %v464_v12  ;;  %v1812_v15 = vadd.f32 %v1722_v33, %v485_v13  ;;  %v431_v16 = vpop.f32.mrf.mxu0  ;;  %v449_v17 = vpop.f32.mrf.mxu1  ;;  %v568_v12 = vsel %vm521_vm1, %v506_v48, -inf  ;;  %v570_v13 = vsel %vm521_vm1, %v507_v60, -inf }
  0xc0   : > { %v432_v18 = vadd.f32 %v1722_v33, %v431_v16  ;;  %v450_v19 = vadd.f32 %v1722_v33, %v449_v17  ;;  %v557_v58 = vmax.f32 %v550_v47, %v556_v10 }
  0xc1   : > { %v509_v20 = vmax.f32 %v465_v14, 0.0  ;;  %v516_v21 = vmax.f32 %v1812_v15, 0.0 }
  0xc2   : > { %v498_v22 = vmax.f32 %v432_v18, 0.0  ;;  %v504_v23 = vmax.f32 %v450_v19, 0.0 }
  0xc3   : > { %537 = vst.msk [vmem:[#allocation3 + $0x78] sm:$0xff] %vm521_vm1, %v509_v20  ;;  %v574_v37 = vsel %vm521_vm1, %v509_v20, -inf  ;;  %v588_v55 = vsel %vm521_vm1, %v516_v21, -inf }
  0xc4   : > { %544 = vst.msk [vmem:[#allocation3 + $0xb0] sm:$0xff] %vm521_vm1, %v516_v21  ;;  %v552_v32 = vsel %vm521_vm1, %v498_v22, -inf  ;;  %v564_v14 = vsel %vm521_vm1, %v504_v23, -inf }
  0xc5   : > { %526 = vst.msk [vmem:[#allocation3 + $0x20] sm:$0xff] %vm521_vm1, %v498_v22  ;;  %v553_v52 = vmax.f32 %v548_v41, %v552_v32  ;;  %v565_v48 = vmax.f32 %v557_v58, %v564_v14  ;;  %v582_v22 = vsel %vm521_vm1, %v513_v49, -inf }
  0xc6   : > { %532 = vst.msk [vmem:[#allocation3 + $0x50] sm:$0xff] %vm521_vm1, %v504_v23  ;;  %v467_v24 = vpop.f32.mrf.mxu2  ;;  %v488_v25 = vpop.f32.mrf.mxu3  ;;  %v572_v23 = vsel %vm521_vm1, %v508_v8, -inf }
  0xc7   : > { %v468_v26 = vadd.f32 %v1722_v33, %v467_v24  ;;  %v489_v27 = vadd.f32 %v1722_v33, %v488_v25  ;;  %v434_v28 = vpop.f32.mrf.mxu0  ;;  %v452_v29 = vpop.f32.mrf.mxu1  ;;  %v561_v6 = vmax.f32 %v553_v52, %v560_v38  ;;  %v584_v24 = vsel %vm521_vm1, %v514_v61, -inf }
  0xc8   : > { %v435_v30 = vadd.f32 %v1722_v33, %v434_v28  ;;  %v453_v31 = vadd.f32 %v1722_v33, %v452_v29  ;;  %v573_v25 = vmax.f32 %v565_v48, %v572_v23 }
  0xc9   : > { %v510_v34 = vmax.f32 %v468_v26, 0.0  ;;  %v517_v35 = vmax.f32 %v489_v27, 0.0  ;;  %v569_v63 = vmax.f32 %v561_v6, %v568_v12 }
  0xca   : > { %v499_v40 = vmax.f32 %v435_v30, 0.0  ;;  %v505_v44 = vmax.f32 %v453_v31, 0.0 }
  0xcb   : > { %538 = vst.msk [vmem:[#allocation3 + $0x80] sm:$0xff] %vm521_vm1, %v510_v34  ;;  %v576_v39 = vsel %vm521_vm1, %v510_v34, -inf  ;;  %v590_v27 = vsel %vm521_vm1, %v517_v35, -inf }
  0xcc   : > { %545 = vst.msk [vmem:[#allocation3 + $0xb8] sm:$0xff] %vm521_vm1, %v517_v35  ;;  %v554_v53 = vsel %vm521_vm1, %v499_v40, -inf  ;;  %v566_v0 = vsel %vm521_vm1, %v505_v44, -inf  ;;  %v577_v18 = vmax.f32 %v569_v63, %v576_v39 }
  0xcd   : > { %527 = vst.msk [vmem:[#allocation3 + $0x28] sm:$0xff] %vm521_vm1, %v499_v40  ;;  %v555_v57 = vmax.f32 %v549_v45, %v554_v53  ;;  %v567_v62 = vmax.f32 %v559_v5, %v566_v0 }
  0xce   : > { %533 = vst.msk [vmem:[#allocation3 + $0x58] sm:$0xff] %vm521_vm1, %v505_v44  ;;  %v470_v46 = vpop.f32.mrf.mxu2  ;;  %v491_v50 = vpop.f32.mrf.mxu3  ;;  %v585_v8 = vmax.f32 %v577_v18, %v584_v24 }
  0xcf   : > { %v471_v1 = vadd.f32 %v1722_v33, %v470_v46  ;;  %v492_v4 = vadd.f32 %v1722_v33, %v491_v50  ;;  %v563_v7 = vmax.f32 %v555_v57, %v562_v59  ;;  %v575_v17 = vmax.f32 %v567_v62, %v574_v37 }
  0xd1   : > { %v511_v51 = vmax.f32 %v471_v1, 0.0  ;;  %v518_v11 = vmax.f32 %v492_v4, 0.0  ;;  %v571_v16 = vmax.f32 %v563_v7, %v570_v13  ;;  %v583_v26 = vmax.f32 %v575_v17, %v582_v22 }
  0xd3   : > { %539 = vst.msk [vmem:[#allocation3 + $0x88] sm:$0xff] %vm521_vm1, %v511_v51  ;;  %v578_v42 = vsel %vm521_vm1, %v511_v51, -inf  ;;  %v592_v43 = vsel %vm521_vm1, %v518_v11, -inf  ;;  %v591_v29 = vmax.f32 %v583_v26, %v590_v27 }
  0xd4   : > { %546 = vst.msk [vmem:[#allocation3 + $0xc0] sm:$0xff] %vm521_vm1, %v518_v11  ;;  %v579_v19 = vmax.f32 %v571_v16, %v578_v42  ;;  %v593_v3 = vmax.f32 %v585_v8, %v592_v43 }
  0xd6   : > { %v473_v54 = vpop.f32.mrf.mxu2 }
  0xd7   : > { %v474_v60 = vadd.f32 %v1722_v33, %v473_v54  ;;  %v586_v33 = vsel %vm521_vm1, %v515_v9, -inf }
  0xd8   : > { %v587_v28 = vmax.f32 %v579_v19, %v586_v33 }
  0xd9   : > { %v512_v20 = vmax.f32 %v474_v60, 0.0 }
  0xda   : > { %v594_v30 = vmax.f32 %v593_v3, %v587_v28 }
  0xdb   : > { %540 = vst.msk [vmem:[#allocation3 + $0x90] sm:$0xff] %vm521_vm1, %v512_v20  ;;  %v580_v49 = vsel %vm521_vm1, %v512_v20, -inf }
  0xdc   : > { %v581_v2 = vmax.f32 %v573_v25, %v580_v49 }
  0xde   : > { %v589_v61 = vmax.f32 %v581_v2, %v588_v55 }
  0xe0   : > { %v595_v9 = vmax.f32 %v589_v61, %v591_v29 }
  0xe2   : > { %v596_v31 = vmax.f32 %v594_v30, %v595_v9 }
  0xe4   : > { %597 = vmax.xlane.f32.xlu0 %v596_v31 }
 0x157   : > { %v598_v32 = vpop.xlane.xlu0 %597 }
 0x158   : > { %v599_v34 = vrot.slane %v598_v32, 4 }
 0x15a   : > { %v600_v35 = vmax.f32 %v598_v32, %v599_v34 }
 0x15c   : > { %v601_v40 = vrot.slane %v600_v35, 2 }
 0x15e   : > { %v602_v41 = vmax.f32 %v600_v35, %v601_v40 }
 0x160   : > { %v603_v44 = vrot.slane %v602_v41, 1 }
 0x162   : > { %v604_v45 = vmax.f32 %v602_v41, %v603_v44 }
 0x164   : > { %1472 = vpush %v604_v45 }
 0x195   : > { %s1473_s29 = spop %1472 }
 0x196   : > { %s606_s30 = smax.f32 %s1473_s29, %s547_s28 }
 0x197   : > { %608 = sst [smem:[#allocation2]] %s606_s30 }
 0x198 PF: > { %p1365_p6 = scmp.ne.s32.totalorder %s1532_s18, 1 }
 0x199   : > { %s644_s6 = sld [smem:[#allocation2]] (!%p1365_p6) }
 0x19a   : > { %612 = sbr.rel (%p1365_p6) target bundleno = 869 (0x365), region = 52  ;;  %s1391_s23 = sld [smem:[#allocation2 + $0x1]] (!%p1365_p6) }
 0x19f   : > { %s645_s7 = sand.u32 2147483647, %s644_s6  ;;  %v643_v0 = vld [vmem:[%s2198_s3 + $0x18] sm:$0xff]  ;;  %v642_v1 = vld [vmem:[%s2198_s3 + $0x10] sm:$0xff]  ;;  %v641_v6 = vld [vmem:[%s2198_s3 + $0x8] sm:$0xff]  ;;  %vm671_vm6 = vcmask 261120  }
 0x1a0   : > { %v646_v15 = vstv %s645_s7  ;;  %v640_v47 = vld [vmem:[%s2198_s3] sm:$0xff]  ;;  %v621_v10 = vld [vmem:[#allocation3 + $0x30] sm:$0xff]  ;;  %v634_v13 = vld [vmem:[#allocation3 + $0x98] sm:$0xff]  ;;  %vm865_vm7 = vcmask 130048  }
 0x1a1   : > { %1511 = vrcp.f32 %v646_v15  ;;  %v658_v53 = vand.u32 2147483648, %v646_v15  ;;  %vm652_vm2 = vweird.f32 %v646_v15  ;;  %v656_v57 = vand.u32 2147483647, %v646_v15  ;;  %v615_v11 = vld [vmem:[#allocation3] sm:$0xff]  ;;  %v616_v14 = vld [vmem:[#allocation3 + $0x8] sm:$0xff]  ;;  %v622_v58 = vld [vmem:[#allocation3 + $0x38] sm:$0xff] }
 0x1a2   : > { %v627_v12 = vld [vmem:[#allocation3 + $0x60] sm:$0xff]  ;;  %v628_v63 = vld [vmem:[#allocation3 + $0x68] sm:$0xff]  ;;  %v617_v37 = vld [vmem:[#allocation3 + $0x10] sm:$0xff] }
 0x1a3   : > { %v659_v38 = vor.u32 1.1754944e-38, %v658_v53  ;;  %vm657_vm5 = vcmp.eq.f32.partialorder %v656_v57, 8.507059e+37  ;;  %v635_v16 = vld [vmem:[#allocation3 + $0xa0] sm:$0xff]  ;;  %v629_v42 = vld [vmem:[#allocation3 + $0x70] sm:$0xff]  ;;  %v636_v48 = vld [vmem:[#allocation3 + $0xa8] sm:$0xff] }
 0x1a4   : > { %v623_v39 = vld [vmem:[#allocation3 + $0x40] sm:$0xff]  ;;  %v618_v17 = vld [vmem:[#allocation3 + $0x18] sm:$0xff]  ;;  %v624_v54 = vld [vmem:[#allocation3 + $0x48] sm:$0xff] }
 0x1a5   : > { %v630_v60 = vld [vmem:[#allocation3 + $0x78] sm:$0xff]  ;;  %v637_v18 = vld [vmem:[#allocation3 + $0xb0] sm:$0xff]  ;;  %v619_v19 = vld [vmem:[#allocation3 + $0x20] sm:$0xff] }
 0x1a6   : > { %v625_v22 = vld [vmem:[#allocation3 + $0x50] sm:$0xff]  ;;  %v631_v23 = vld [vmem:[#allocation3 + $0x80] sm:$0xff]  ;;  %v638_v20 = vld [vmem:[#allocation3 + $0xb8] sm:$0xff] }
 0x1a7   : > { %v1512_v21 = vpop.eup %1511  ;;  %v620_v24 = vld [vmem:[#allocation3 + $0x28] sm:$0xff]  ;;  %v626_v25 = vld [vmem:[#allocation3 + $0x58] sm:$0xff]  ;;  %v639_v33 = vld [vmem:[#allocation3 + $0xc0] sm:$0xff] }
 0x1a8   : > { %v648_v52 = vmul.f32 %v1512_v21, %v646_v15  ;;  %vm653_vm3 = vweird.f32 %v1512_v21  ;;  %v632_v26 = vld [vmem:[#allocation3 + $0x88] sm:$0xff]  ;;  %v633_v27 = vld [vmem:[#allocation3 + $0x90] sm:$0xff]  ;;  %v1931_v35 = vld [vmem:[%s2199_s4] ss:$0 sm:$0xff] }
 0x1a9   : > { %vm654_vm4 = vmor %vm652_vm2, %vm653_vm3 }
 0x1aa   : > { %v649_v56 = vsub.f32 1.0, %v648_v52 }
 0x1ac   : > { %v650_v36 = vmul.f32 %v1512_v21, %v649_v56 }
 0x1ae   : > { %v651_v46 = vadd.f32 %v1512_v21, %v650_v36 }
 0x1b0   : > { %v655_v50 = vsel %vm654_vm4, %v1512_v21, %v651_v46 }
 0x1b1   : > { %v660_v59 = vsel %vm657_vm5, %v659_v38, %v655_v50 }
 0x1b2   : > { %1474 = vpush %v660_v59 }
 0x1e3   : > { %s1475_s10 = spop %1474 }
 0x1e4   : > { %v662_v4 = vstv %s1475_s10 }
 0x1e5   : > { %v666_v5 = vmul.f32 %v662_v4, %v643_v0  ;;  %v665_v7 = vmul.f32 %v662_v4, %v642_v1  ;;  %v664_v51 = vmul.f32 %v662_v4, %v641_v6  ;;  %v663_v62 = vmul.f32 %v662_v4, %v640_v47 }
 0x1e7   : > { %759 = vmatpush.msra.mxu0 %v666_v5  ;;  %1448 = vmatpush.msra.mxu1 %v666_v5 }
 0x1e8   : > { %1449 = vmatpush.msra.mxu2 %v666_v5  ;;  %1450 = vmatpush.msra.mxu3 %v666_v5 }
 0x1e9   : > { %760 = vmatpush.msra.mxu0 %v665_v7  ;;  %1451 = vmatpush.msra.mxu1 %v665_v7 }
 0x1ea   : > { %1452 = vmatpush.msra.mxu2 %v665_v7  ;;  %1453 = vmatpush.msra.mxu3 %v665_v7 }
 0x1eb   : > { %761 = vmatpush.msra.mxu0 %v664_v51  ;;  %1454 = vmatpush.msra.mxu1 %v664_v51 }
 0x1ec   : > { %1455 = vmatpush.msra.mxu2 %v664_v51  ;;  %1456 = vmatpush.msra.mxu3 %v664_v51 }
 0x1ed   : > { %762 = vmatpush.msra.mxu0 %v663_v62  ;;  %1457 = vmatpush.msra.mxu1 %v663_v62 }
 0x1ee   : > { %1458 = vmatpush.msra.mxu2 %v663_v62  ;;  %1459 = vmatpush.msra.mxu3 %v663_v62 }
 0x1ef   : > { %1366 = vmatmul.msk.f32.vlgmr.msra.gmra.mxu0 %vm671_vm6, %v615_v11  ;;  %1372 = vmatmul.msk.f32.vlgmr.msra.gmra.mxu1 %vm671_vm6, %v621_v10 }
 0x1f0   : > { %1378 = vmatmul.msk.f32.vlgmr.msra.gmra.mxu2 %vm671_vm6, %v627_v12  ;;  %1385 = vmatmul.msk.f32.vlgmr.msra.gmra.mxu3 %vm671_vm6, %v634_v13 }
 0x1f7   : > { %1367 = vmatmul.msk.f32.gmra.mxu0 %vm671_vm6, %v616_v14  ;;  %1373 = vmatmul.msk.f32.gmra.mxu1 %vm671_vm6, %v622_v58 }
 0x1f8   : > { %1379 = vmatmul.msk.f32.gmra.mxu2 %vm671_vm6, %v628_v63  ;;  %1386 = vmatmul.msk.f32.gmra.mxu3 %vm671_vm6, %v635_v16 }
 0x1ff   : > { %1368 = vmatmul.msk.f32.gmra.mxu0 %vm671_vm6, %v617_v37  ;;  %1374 = vmatmul.msk.f32.gmra.mxu1 %vm671_vm6, %v623_v39 }
 0x200   : > { %1380 = vmatmul.msk.f32.gmra.mxu2 %vm671_vm6, %v629_v42  ;;  %1387 = vmatmul.msk.f32.gmra.mxu3 %vm671_vm6, %v636_v48 }
 0x207   : > { %1369 = vmatmul.msk.f32.gmra.mxu0 %vm671_vm6, %v618_v17  ;;  %1375 = vmatmul.msk.f32.gmra.mxu1 %vm671_vm6, %v624_v54 }
 0x208   : > { %1381 = vmatmul.msk.f32.gmra.mxu2 %vm671_vm6, %v630_v60  ;;  %1388 = vmatmul.msk.f32.gmra.mxu3 %vm671_vm6, %v637_v18 }
 0x20f   : > { %1370 = vmatmul.msk.f32.gmra.mxu0 %vm671_vm6, %v619_v19  ;;  %1376 = vmatmul.msk.f32.gmra.mxu1 %vm671_vm6, %v625_v22 }
 0x210   : > { %1382 = vmatmul.msk.f32.gmra.mxu2 %vm671_vm6, %v631_v23  ;;  %1389 = vmatmul.msk.f32.gmra.mxu3 %vm671_vm6, %v638_v20 }
 0x217   : > { %1371 = vmatmul.msk.f32.gmra.mxu0 %vm671_vm6, %v620_v24  ;;  %1377 = vmatmul.msk.f32.gmra.mxu1 %vm671_vm6, %v626_v25 }
 0x218   : > { %1383 = vmatmul.msk.f32.gmra.mxu2 %vm671_vm6, %v632_v26  ;;  %1390 = vmatmul.msk.f32.gmra.mxu3 %vm671_vm6, %v639_v33 }
 0x220   : > { %1384 = vmatmul.msk.f32.gmra.mxu2 %vm671_vm6, %v633_v27 }
 0x26c   : > { %v764_v43 = vpop.f32.mrf.mxu0  ;;  %v782_v49 = vpop.f32.mrf.mxu1 }
 0x26d   : > { %v765_v44 = vadd.f32 %v1931_v35, %v764_v43  ;;  %v783_v21 = vadd.f32 %v1931_v35, %v782_v49 }
 0x26f   : > { %v839_v53 = vmax.f32 %v765_v44, 0.0  ;;  %v845_v57 = vmax.f32 %v783_v21, 0.0 }
 0x271   : > { %v866_v1 = vsel %vm865_vm7, %v839_v53, -inf  ;;  %v874_v10 = vsel %vm865_vm7, %v845_v57, -inf }
 0x273   : > { %v800_v2 = vpop.f32.mrf.mxu2  ;;  %v821_v8 = vpop.f32.mrf.mxu3 }
 0x274   : > { %v767_v28 = vpop.f32.mrf.mxu0  ;;  %v785_v55 = vpop.f32.mrf.mxu1  ;;  %v801_v4 = vadd.f32 %v1931_v35, %v800_v2  ;;  %v1950_v12 = vadd.f32 %v1931_v35, %v821_v8 }
 0x275   : > { %v768_v56 = vadd.f32 %v1931_v35, %v767_v28  ;;  %v786_v46 = vadd.f32 %v1931_v35, %v785_v55 }
 0x276   : > { %v851_v39 = vmax.f32 %v801_v4, 0.0  ;;  %v858_v25 = vmax.f32 %v1950_v12, 0.0 }
 0x277   : > { %v840_v47 = vmax.f32 %v768_v56, 0.0  ;;  %v846_v58 = vmax.f32 %v786_v46, 0.0 }
 0x279   : > { %v867_v54 = vsel %vm865_vm7, %v840_v47, -inf  ;;  %v876_v26 = vsel %vm865_vm7, %v846_v58, -inf }
 0x27b   : > { %v803_v61 = vpop.f32.mrf.mxu2  ;;  %v1924_v29 = vpop.f32.mrf.mxu3 }
 0x27c   : > { %v770_v3 = vpop.f32.mrf.mxu0  ;;  %v788_v30 = vpop.f32.mrf.mxu1  ;;  %v804_v63 = vadd.f32 %v1931_v35, %v803_v61 }
 0x27d   : > { %v789_v50 = vadd.f32 %v1931_v35, %v788_v30  ;;  %v771_v51 = vadd.f32 %v1931_v35, %v770_v3 }
 0x27e   : > { %v852_v33 = vmax.f32 %v804_v63, 0.0 }
 0x27f   : > { %v847_v16 = vmax.f32 %v789_v50, 0.0  ;;  %v841_v60 = vmax.f32 %v771_v51, 0.0 }
 0x280   : > { %v888_v21 = vsel %vm865_vm7, %v852_v33, -inf }
 0x281   : > { %v878_v27 = vsel %vm865_vm7, %v847_v16, -inf }
 0x283   : > { %v806_v9 = vpop.f32.mrf.mxu2  ;;  %v1926_v31 = vpop.f32.mrf.mxu3 }
 0x284   : > { %v773_v32 = vpop.f32.mrf.mxu0  ;;  %v791_v34 = vpop.f32.mrf.mxu1  ;;  %v807_v55 = vadd.f32 %v1931_v35, %v806_v9  ;;  %v828_v9 = vadd.f32 %v1931_v35, %v1926_v31 }
 0x285   : > { %v774_v36 = vadd.f32 %v1931_v35, %v773_v32  ;;  %v792_v5 = vadd.f32 %v1931_v35, %v791_v34  ;;  %v868_v34 = vsel %vm865_vm7, %v841_v60, -inf }
 0x286   : > { %v853_v46 = vmax.f32 %v807_v55, 0.0 }
 0x287   : > { %v842_v13 = vmax.f32 %v774_v36, 0.0  ;;  %v848_v42 = vmax.f32 %v792_v5, 0.0 }
 0x289   : > { %v869_v22 = vsel %vm865_vm7, %v842_v13, -inf  ;;  %v880_v49 = vsel %vm865_vm7, %v848_v42, -inf  ;;  %v900_v13 = vsel %vm865_vm7, %v858_v25, -inf }
 0x28a   : > { %v877_v61 = vmax.f32 %v869_v22, %v876_v26 }
 0x28b   : > { %v809_v40 = vpop.f32.mrf.mxu2  ;;  %v1933_v41 = vpop.f32.mrf.mxu3 }
 0x28c   : > { %v776_v45 = vpop.f32.mrf.mxu0  ;;  %v794_v15 = vpop.f32.mrf.mxu1  ;;  %v810_v23 = vadd.f32 %v1931_v35, %v809_v40  ;;  %v831_v4 = vadd.f32 %v1931_v35, %v1933_v41 }
 0x28d   : > { %v777_v52 = vadd.f32 %v1931_v35, %v776_v45  ;;  %v795_v48 = vadd.f32 %v1931_v35, %v794_v15  ;;  %v886_v15 = vsel %vm865_vm7, %v851_v39, -inf }
 0x28e   : > { %v854_v40 = vmax.f32 %v810_v23, 0.0  ;;  %v861_v41 = vmax.f32 %v831_v4, 0.0 }
 0x28f   : > { %v843_v38 = vmax.f32 %v777_v52, 0.0  ;;  %v849_v2 = vmax.f32 %v795_v48, 0.0  ;;  %v825_v52 = vadd.f32 %v1931_v35, %v1924_v29 }
 0x291   : > { %v870_v14 = vsel %vm865_vm7, %v843_v38, -inf  ;;  %v882_v56 = vsel %vm865_vm7, %v849_v2, -inf  ;;  %v875_v38 = vmax.f32 %v868_v34, %v874_v10  ;;  %v859_v31 = vmax.f32 %v825_v52, 0.0 }
 0x292   : > { %v871_v18 = vmax.f32 %v866_v1, %v870_v14  ;;  %v892_v1 = vsel %vm865_vm7, %v854_v40, -inf  ;;  %v890_v14 = vsel %vm865_vm7, %v853_v46, -inf }
 0x293   : > { %v812_v59 = vpop.f32.mrf.mxu2  ;;  %v833_v0 = vpop.f32.mrf.mxu3  ;;  %v902_v63 = vsel %vm865_vm7, %v859_v31, -inf }
 0x294   : > { %v779_v6 = vpop.f32.mrf.mxu0  ;;  %v797_v7 = vpop.f32.mrf.mxu1  ;;  %v813_v20 = vadd.f32 %v1931_v35, %v812_v59  ;;  %v879_v3 = vmax.f32 %v871_v18, %v878_v27  ;;  %v834_v57 = vadd.f32 %v1931_v35, %v833_v0  ;;  %v860_v0 = vmax.f32 %v828_v9, 0.0 }
 0x295   : > { %v780_v62 = vadd.f32 %v1931_v35, %v779_v6  ;;  %v798_v11 = vadd.f32 %v1931_v35, %v797_v7  ;;  %v883_v6 = vmax.f32 %v875_v38, %v882_v56  ;;  %v906_v18 = vsel %vm865_vm7, %v861_v41, -inf }
 0x296   : > { %v855_v44 = vmax.f32 %v813_v20, 0.0  ;;  %v887_v50 = vmax.f32 %v879_v3, %v886_v15  ;;  %v862_v51 = vmax.f32 %v834_v57, 0.0  ;;  %v904_v39 = vsel %vm865_vm7, %v860_v0, -inf }
 0x297   : > { %v844_v37 = vmax.f32 %v780_v62, 0.0  ;;  %v850_v17 = vmax.f32 %v798_v11, 0.0  ;;  %v891_v16 = vmax.f32 %v883_v6, %v890_v14 }
 0x298   : > { %v894_v29 = vsel %vm865_vm7, %v855_v44, -inf  ;;  %v908_v42 = vsel %vm865_vm7, %v862_v51, -inf }
 0x299   : > { %v872_v19 = vsel %vm865_vm7, %v844_v37, -inf  ;;  %v884_v8 = vsel %vm865_vm7, %v850_v17, -inf  ;;  %v895_v10 = vmax.f32 %v887_v50, %v894_v29 }
 0x29a   : > { %v873_v24 = vmax.f32 %v867_v54, %v872_v19  ;;  %v885_v53 = vmax.f32 %v877_v61, %v884_v8 }
 0x29b   : > { %v815_v43 = vpop.f32.mrf.mxu2  ;;  %v836_v32 = vpop.f32.mrf.mxu3  ;;  %v903_v54 = vmax.f32 %v895_v10, %v902_v63 }
 0x29c   : > { %v816_v28 = vadd.f32 %v1931_v35, %v815_v43  ;;  %v881_v30 = vmax.f32 %v873_v24, %v880_v49  ;;  %v837_v36 = vadd.f32 %v1931_v35, %v836_v32  ;;  %v893_v7 = vmax.f32 %v885_v53, %v892_v1 }
 0x29e   : > { %v856_v45 = vmax.f32 %v816_v28, 0.0  ;;  %v889_v59 = vmax.f32 %v881_v30, %v888_v21  ;;  %v863_v62 = vmax.f32 %v837_v36, 0.0  ;;  %v901_v37 = vmax.f32 %v893_v7, %v900_v13 }
 0x2a0   : > { %v896_v5 = vsel %vm865_vm7, %v856_v45, -inf  ;;  %v910_v48 = vsel %vm865_vm7, %v863_v62, -inf  ;;  %v909_v22 = vmax.f32 %v901_v37, %v908_v42 }
 0x2a1   : > { %v897_v12 = vmax.f32 %v889_v59, %v896_v5  ;;  %v911_v23 = vmax.f32 %v903_v54, %v910_v48 }
 0x2a3   : > { %v818_v47 = vpop.f32.mrf.mxu2  ;;  %v905_v60 = vmax.f32 %v897_v12, %v904_v39 }
 0x2a4   : > { %v819_v11 = vadd.f32 %v1931_v35, %v818_v47 }
 0x2a5   : > { %v912_v20 = vmax.f32 %v911_v23, %v905_v60 }
 0x2a6   : > { %v857_v58 = vmax.f32 %v819_v11, 0.0 }
 0x2a8   : > { %v898_v35 = vsel %vm865_vm7, %v857_v58, -inf }
 0x2a9   : > { %v899_v17 = vmax.f32 %v891_v16, %v898_v35 }
 0x2ab   : > { %v907_v19 = vmax.f32 %v899_v17, %v906_v18 }
 0x2ad   : > { %v913_v24 = vmax.f32 %v907_v19, %v909_v22 }
 0x2af   : > { %v914_v25 = vmax.f32 %v912_v20, %v913_v24 }
 0x2b1   : > { %915 = vmax.xlane.f32.xlu0 %v914_v25 }
 0x324   : > { %v916_v26 = vpop.xlane.xlu0 %915 }
 0x325   : > { %v917_v33 = vrot.slane %v916_v26, 4 }
 0x327   : > { %v918_v27 = vmax.f32 %v916_v26, %v917_v33 }
 0x329   : > { %v919_v43 = vrot.slane %v918_v27, 2 }
 0x32b   : > { %v920_v49 = vmax.f32 %v918_v27, %v919_v43 }
 0x32d   : > { %v921_v2 = vrot.slane %v920_v49, 1 }
 0x32f   : > { %v922_v8 = vmax.f32 %v920_v49, %v921_v2 }
 0x331   : > { %1476 = vpush %v922_v8 }
 0x362   : > { %s1477_s24 = spop %1476 }
 0x363   : > { %s924_s25 = smax.f32 %s1477_s24, %s1391_s23 }
 0x364   : > { %926 = sst [smem:[#allocation2 + $0x1]] %s924_s25 }
 0x365 PF: > { %p1392_p7 = scmp.ne.s32.totalorder %s1532_s18, 2 }
 0x366   : > { %s962_s26 = sld [smem:[#allocation2]] (!%p1392_p7) }
 0x367   : > { %930 = sbr.rel (%p1392_p7) target bundleno = 1143 (0x477), region = 56  ;;  %s1418_s11 = sld [smem:[#allocation2 + $0x1]] (!%p1392_p7) }
 0x36c   : > { %s963_s27 = sand.u32 2147483647, %s962_s26  ;;  %v961_v21 = vld [vmem:[%s2198_s3 + $0x18] sm:$0xff]  ;;  %v960_v52 = vld [vmem:[%s2198_s3 + $0x10] sm:$0xff]  ;;  %v959_v56 = vld [vmem:[%s2198_s3 + $0x8] sm:$0xff]  ;;  %vm989_vm12 = vcmask 261120  }
 0x36d   : > { %v964_v28 = vstv %s963_s27  ;;  %v958_v36 = vld [vmem:[%s2198_s3] sm:$0xff]  ;;  %v952_v59 = vld [vmem:[#allocation3 + $0x98] sm:$0xff]  ;;  %v939_v4 = vld [vmem:[#allocation3 + $0x30] sm:$0xff]  ;;  %s1183_s12 = sand.u32 2147483647, %s1418_s11  ;;  %vm1226_vm1 = vcmask 130048  }
 0x36e   : > { %1514 = vrcp.f32 %v964_v28  ;;  %v976_v3 = vand.u32 2147483648, %v964_v28  ;;  %vm970_vm8 = vweird.f32 %v964_v28  ;;  %v974_v32 = vand.u32 2147483647, %v964_v28  ;;  %v945_v50 = vld [vmem:[#allocation3 + $0x60] sm:$0xff]  ;;  %v946_v29 = vld [vmem:[#allocation3 + $0x68] sm:$0xff]  ;;  %v940_v6 = vld [vmem:[#allocation3 + $0x38] sm:$0xff] }
 0x36f   : > { %v933_v1 = vld [vmem:[#allocation3] sm:$0xff]  ;;  %v934_v31 = vld [vmem:[#allocation3 + $0x8] sm:$0xff]  ;;  %v947_v7 = vld [vmem:[#allocation3 + $0x70] sm:$0xff]  ;;  %v1184_v62 = vstv %s1183_s12 }
 0x370   : > { %v977_v40 = vor.u32 1.1754944e-38, %v976_v3  ;;  %vm975_vm11 = vcmp.eq.f32.partialorder %v974_v32, 8.507059e+37  ;;  %v953_v5 = vld [vmem:[#allocation3 + $0xa0] sm:$0xff]  ;;  %v954_v47 = vld [vmem:[#allocation3 + $0xa8] sm:$0xff]  ;;  %v935_v0 = vld [vmem:[#allocation3 + $0x10] sm:$0xff]  ;;  %1516 = vrcp.f32 %v1184_v62  ;;  %v1196_v58 = vand.u32 2147483648, %v1184_v62 }
 0x371   : > { %v941_v51 = vld [vmem:[#allocation3 + $0x40] sm:$0xff]  ;;  %v948_v11 = vld [vmem:[#allocation3 + $0x78] sm:$0xff]  ;;  %v955_v10 = vld [vmem:[#allocation3 + $0xb0] sm:$0xff]  ;;  %vm1190_vm13 = vweird.f32 %v1184_v62  ;;  %v1194_v16 = vand.u32 2147483647, %v1184_v62 }
 0x372   : > { %v936_v12 = vld [vmem:[#allocation3 + $0x18] sm:$0xff]  ;;  %v942_v13 = vld [vmem:[#allocation3 + $0x48] sm:$0xff]  ;;  %v949_v39 = vld [vmem:[#allocation3 + $0x80] sm:$0xff]  ;;  %v1197_v48 = vor.u32 1.1754944e-38, %v1196_v58 }
 0x373   : > { %v956_v42 = vld [vmem:[#allocation3 + $0xb8] sm:$0xff]  ;;  %v937_v35 = vld [vmem:[#allocation3 + $0x20] sm:$0xff]  ;;  %v943_v17 = vld [vmem:[#allocation3 + $0x50] sm:$0xff]  ;;  %vm1195_vm0 = vcmp.eq.f32.partialorder %v1194_v16, 8.507059e+37 }
 0x374   : > { %v1515_v55 = vpop.eup %1514  ;;  %v950_v19 = vld [vmem:[#allocation3 + $0x88] sm:$0xff]  ;;  %v957_v22 = vld [vmem:[#allocation3 + $0xc0] sm:$0xff]  ;;  %v944_v20 = vld [vmem:[#allocation3 + $0x58] sm:$0xff] }
 0x375   : > { %v966_v61 = vmul.f32 %v1515_v55, %v964_v28  ;;  %vm971_vm9 = vweird.f32 %v1515_v55  ;;  %v938_v23 = vld [vmem:[#allocation3 + $0x28] sm:$0xff]  ;;  %v951_v24 = vld [vmem:[#allocation3 + $0x90] sm:$0xff]  ;;  %v2032_v25 = vld [vmem:[%s2199_s4] ss:$0 sm:$0xff] }
 0x376   : > { %vm972_vm10 = vmor %vm970_vm8, %vm971_vm9  ;;  %v1517_v14 = vpop.eup %1516 }
 0x377   : > { %v967_v30 = vsub.f32 1.0, %v966_v61  ;;  %v1186_v41 = vmul.f32 %v1517_v14, %v1184_v62  ;;  %vm1191_vm14 = vweird.f32 %v1517_v14 }
 0x378   : > { %vm1192_vm15 = vmor %vm1190_vm13, %vm1191_vm14 }
 0x379   : > { %v968_v34 = vmul.f32 %v1515_v55, %v967_v30  ;;  %v1187_v63 = vsub.f32 1.0, %v1186_v41 }
 0x37b   : > { %v969_v44 = vadd.f32 %v1515_v55, %v968_v34  ;;  %v1188_v37 = vmul.f32 %v1517_v14, %v1187_v63 }
 0x37d   : > { %v973_v45 = vsel %vm972_vm10, %v1515_v55, %v969_v44  ;;  %v1189_v54 = vadd.f32 %v1517_v14, %v1188_v37 }
 0x37e   : > { %v978_v15 = vsel %vm975_vm11, %v977_v40, %v973_v45 }
 0x37f   : > { %1478 = vpush %v978_v15  ;;  %v1193_v60 = vsel %vm1192_vm15, %v1517_v14, %v1189_v54 }
 0x380   : > { %v1198_v18 = vsel %vm1195_vm0, %v1197_v48, %v1193_v60 }
 0x381   : > { %1480 = vpush %v1198_v18 }
 0x3b0   : > { %s1479_s29 = spop %1478 }
 0x3b1   : > { %v980_v53 = vstv %s1479_s29 }
 0x3b2   : > { %v984_v9 = vmul.f32 %v980_v53, %v961_v21  ;;  %v983_v57 = vmul.f32 %v980_v53, %v960_v52  ;;  %v982_v38 = vmul.f32 %v980_v53, %v959_v56  ;;  %v981_v46 = vmul.f32 %v980_v53, %v958_v36  ;;  %s1481_s15 = spop %1480 }
 0x3b3   : > { %v2036_v8 = vstv %s1481_s15 }
 0x3b4   : > { %1077 = vmatpush.msra.mxu0 %v984_v9  ;;  %1460 = vmatpush.msra.mxu1 %v984_v9 }
 0x3b5   : > { %1461 = vmatpush.msra.mxu2 %v984_v9  ;;  %1462 = vmatpush.msra.mxu3 %v984_v9 }
 0x3b6   : > { %1078 = vmatpush.msra.mxu0 %v983_v57  ;;  %1463 = vmatpush.msra.mxu1 %v983_v57 }
 0x3b7   : > { %1464 = vmatpush.msra.mxu2 %v983_v57  ;;  %1465 = vmatpush.msra.mxu3 %v983_v57 }
 0x3b8   : > { %1079 = vmatpush.msra.mxu0 %v982_v38  ;;  %1466 = vmatpush.msra.mxu1 %v982_v38 }
 0x3b9   : > { %1467 = vmatpush.msra.mxu2 %v982_v38  ;;  %1468 = vmatpush.msra.mxu3 %v982_v38 }
 0x3ba   : > { %1080 = vmatpush.msra.mxu0 %v981_v46  ;;  %1469 = vmatpush.msra.mxu1 %v981_v46 }
 0x3bb   : > { %1470 = vmatpush.msra.mxu2 %v981_v46  ;;  %1471 = vmatpush.msra.mxu3 %v981_v46 }
 0x3bc   : > { %1405 = vmatmul.msk.f32.vlgmr.msra.gmra.mxu2 %vm989_vm12, %v945_v50  ;;  %1412 = vmatmul.msk.f32.vlgmr.msra.gmra.mxu3 %vm989_vm12, %v952_v59 }
 0x3bd   : > { %1393 = vmatmul.msk.f32.vlgmr.msra.gmra.mxu0 %vm989_vm12, %v933_v1  ;;  %1399 = vmatmul.msk.f32.vlgmr.msra.gmra.mxu1 %vm989_vm12, %v939_v4 }
 0x3c4   : > { %1406 = vmatmul.msk.f32.gmra.mxu2 %vm989_vm12, %v946_v29  ;;  %1413 = vmatmul.msk.f32.gmra.mxu3 %vm989_vm12, %v953_v5 }
 0x3c5   : > { %1394 = vmatmul.msk.f32.gmra.mxu0 %vm989_vm12, %v934_v31  ;;  %1400 = vmatmul.msk.f32.gmra.mxu1 %vm989_vm12, %v940_v6 }
 0x3cc   : > { %1407 = vmatmul.msk.f32.gmra.mxu2 %vm989_vm12, %v947_v7  ;;  %1414 = vmatmul.msk.f32.gmra.mxu3 %vm989_vm12, %v954_v47 }
 0x3cd   : > { %1395 = vmatmul.msk.f32.gmra.mxu0 %vm989_vm12, %v935_v0  ;;  %1401 = vmatmul.msk.f32.gmra.mxu1 %vm989_vm12, %v941_v51 }
 0x3d4   : > { %1408 = vmatmul.msk.f32.gmra.mxu2 %vm989_vm12, %v948_v11  ;;  %1415 = vmatmul.msk.f32.gmra.mxu3 %vm989_vm12, %v955_v10 }
 0x3d5   : > { %1396 = vmatmul.msk.f32.gmra.mxu0 %vm989_vm12, %v936_v12  ;;  %1402 = vmatmul.msk.f32.gmra.mxu1 %vm989_vm12, %v942_v13 }
 0x3dc   : > { %1409 = vmatmul.msk.f32.gmra.mxu2 %vm989_vm12, %v949_v39  ;;  %1416 = vmatmul.msk.f32.gmra.mxu3 %vm989_vm12, %v956_v42 }
 0x3dd   : > { %1397 = vmatmul.msk.f32.gmra.mxu0 %vm989_vm12, %v937_v35  ;;  %1403 = vmatmul.msk.f32.gmra.mxu1 %vm989_vm12, %v943_v17 }
 0x3e4   : > { %1410 = vmatmul.msk.f32.gmra.mxu2 %vm989_vm12, %v950_v19  ;;  %1417 = vmatmul.msk.f32.gmra.mxu3 %vm989_vm12, %v957_v22 }
 0x3e5   : > { %1398 = vmatmul.msk.f32.gmra.mxu0 %vm989_vm12, %v938_v23  ;;  %1404 = vmatmul.msk.f32.gmra.mxu1 %vm989_vm12, %v944_v20 }
 0x3ec   : > { %1411 = vmatmul.msk.f32.gmra.mxu2 %vm989_vm12, %v951_v24 }
 0x43a   : > { %v1082_v26 = vpop.f32.mrf.mxu0  ;;  %v1100_v33 = vpop.f32.mrf.mxu1 }
 0x43b   : > { %v1083_v27 = vadd.f32 %v2032_v25, %v1082_v26  ;;  %v1101_v43 = vadd.f32 %v2032_v25, %v1100_v33 }
 0x43d   : > { %v1157_v49 = vmax.f32 %v1083_v27, 0.0  ;;  %v1163_v2 = vmax.f32 %v1101_v43, 0.0 }
 0x43f   : > { %v1118_v28 = vpop.f32.mrf.mxu2  ;;  %v1201_v55 = vmul.f32 %v2036_v8, %v1157_v49  ;;  %v1207_v61 = vmul.f32 %v2036_v8, %v1163_v2  ;;  %v1139_v3 = vpop.f32.mrf.mxu3 }
 0x440   : > { %v1119_v30 = vadd.f32 %v2032_v25, %v1118_v28  ;;  %v1140_v32 = vadd.f32 %v2032_v25, %v1139_v3 }
 0x441   : > { %1227 = vst.msk [vmem:[%s2200_s5] sm:$0xff] %vm1226_vm1, %v1201_v55 }
 0x442   : > { %v1169_v34 = vmax.f32 %v1119_v30, 0.0  ;;  %1233 = vst.msk [vmem:[%s2200_s5 + $0x30] sm:$0xff] %vm1226_vm1, %v1207_v61  ;;  %v1176_v40 = vmax.f32 %v1140_v32, 0.0  ;;  %v1085_v44 = vpop.f32.mrf.mxu0  ;;  %v1103_v45 = vpop.f32.mrf.mxu1 }
 0x443   : > { %v1086_v15 = vadd.f32 %v2032_v25, %v1085_v44  ;;  %v1104_v21 = vadd.f32 %v2032_v25, %v1103_v45 }
 0x444   : > { %v1213_v52 = vmul.f32 %v2036_v8, %v1169_v34  ;;  %v1220_v53 = vmul.f32 %v2036_v8, %v1176_v40 }
 0x445   : > { %v1158_v9 = vmax.f32 %v1086_v15, 0.0  ;;  %v1164_v56 = vmax.f32 %v1104_v21, 0.0 }
 0x446   : > { %1239 = vst.msk [vmem:[%s2200_s5 + $0x60] sm:$0xff] %vm1226_vm1, %v1213_v52 }
 0x447   : > { %v1121_v57 = vpop.f32.mrf.mxu2  ;;  %1246 = vst.msk [vmem:[%s2200_s5 + $0x98] sm:$0xff] %vm1226_vm1, %v1220_v53  ;;  %v1202_v36 = vmul.f32 %v2036_v8, %v1158_v9  ;;  %v1208_v38 = vmul.f32 %v2036_v8, %v1164_v56  ;;  %v1142_v46 = vpop.f32.mrf.mxu3 }
 0x448   : > { %v1122_v50 = vadd.f32 %v2032_v25, %v1121_v57  ;;  %v1143_v59 = vadd.f32 %v2032_v25, %v1142_v46 }
 0x449   : > { %1228 = vst.msk [vmem:[%s2200_s5 + $0x8] sm:$0xff] %vm1226_vm1, %v1202_v36 }
 0x44a   : > { %v1170_v1 = vmax.f32 %v1122_v50, 0.0  ;;  %1234 = vst.msk [vmem:[%s2200_s5 + $0x38] sm:$0xff] %vm1226_vm1, %v1208_v38  ;;  %v1177_v4 = vmax.f32 %v1143_v59, 0.0  ;;  %v1088_v29 = vpop.f32.mrf.mxu0  ;;  %v1106_v5 = vpop.f32.mrf.mxu1 }
 0x44b   : > { %v1089_v31 = vadd.f32 %v2032_v25, %v1088_v29  ;;  %v1107_v6 = vadd.f32 %v2032_v25, %v1106_v5 }
 0x44c   : > { %v1214_v7 = vmul.f32 %v2036_v8, %v1170_v1  ;;  %v1221_v47 = vmul.f32 %v2036_v8, %v1177_v4 }
 0x44d   : > { %v1159_v0 = vmax.f32 %v1089_v31, 0.0  ;;  %v1165_v51 = vmax.f32 %v1107_v6, 0.0 }
 0x44e   : > { %1240 = vst.msk [vmem:[%s2200_s5 + $0x68] sm:$0xff] %vm1226_vm1, %v1214_v7 }
 0x44f   : > { %v1124_v62 = vpop.f32.mrf.mxu2  ;;  %1247 = vst.msk [vmem:[%s2200_s5 + $0xa0] sm:$0xff] %vm1226_vm1, %v1221_v47  ;;  %v1203_v11 = vmul.f32 %v2036_v8, %v1159_v0  ;;  %v1209_v10 = vmul.f32 %v2036_v8, %v1165_v51  ;;  %v1145_v12 = vpop.f32.mrf.mxu3 }
 0x450   : > { %v1125_v13 = vadd.f32 %v2032_v25, %v1124_v62  ;;  %v1146_v14 = vadd.f32 %v2032_v25, %v1145_v12 }
 0x451   : > { %1229 = vst.msk [vmem:[%s2200_s5 + $0x10] sm:$0xff] %vm1226_vm1, %v1203_v11 }
 0x452   : > { %v1171_v41 = vmax.f32 %v1125_v13, 0.0  ;;  %1235 = vst.msk [vmem:[%s2200_s5 + $0x40] sm:$0xff] %vm1226_vm1, %v1209_v10  ;;  %v1178_v58 = vmax.f32 %v1146_v14, 0.0  ;;  %v1091_v63 = vpop.f32.mrf.mxu0  ;;  %v1109_v16 = vpop.f32.mrf.mxu1 }
 0x453   : > { %v1092_v37 = vadd.f32 %v2032_v25, %v1091_v63  ;;  %v1110_v39 = vadd.f32 %v2032_v25, %v1109_v16 }
 0x454   : > { %v1215_v42 = vmul.f32 %v2036_v8, %v1171_v41  ;;  %v1222_v48 = vmul.f32 %v2036_v8, %v1178_v58 }
 0x455   : > { %v1160_v35 = vmax.f32 %v1092_v37, 0.0  ;;  %v1166_v17 = vmax.f32 %v1110_v39, 0.0 }
 0x456   : > { %1241 = vst.msk [vmem:[%s2200_s5 + $0x70] sm:$0xff] %vm1226_vm1, %v1215_v42 }
 0x457   : > { %v1127_v54 = vpop.f32.mrf.mxu2  ;;  %1248 = vst.msk [vmem:[%s2200_s5 + $0xa8] sm:$0xff] %vm1226_vm1, %v1222_v48  ;;  %v1204_v60 = vmul.f32 %v2036_v8, %v1160_v35  ;;  %v1210_v18 = vmul.f32 %v2036_v8, %v1166_v17  ;;  %v1148_v19 = vpop.f32.mrf.mxu3 }
 0x458   : > { %v1128_v22 = vadd.f32 %v2032_v25, %v1127_v54  ;;  %v1149_v23 = vadd.f32 %v2032_v25, %v1148_v19 }
 0x459   : > { %1230 = vst.msk [vmem:[%s2200_s5 + $0x18] sm:$0xff] %vm1226_vm1, %v1204_v60 }
 0x45a   : > { %v1172_v20 = vmax.f32 %v1128_v22, 0.0  ;;  %1236 = vst.msk [vmem:[%s2200_s5 + $0x48] sm:$0xff] %vm1226_vm1, %v1210_v18  ;;  %v1179_v24 = vmax.f32 %v1149_v23, 0.0  ;;  %v1094_v26 = vpop.f32.mrf.mxu0  ;;  %v1112_v33 = vpop.f32.mrf.mxu1 }
 0x45b   : > { %v1095_v27 = vadd.f32 %v2032_v25, %v1094_v26  ;;  %v1113_v43 = vadd.f32 %v2032_v25, %v1112_v33 }
 0x45c   : > { %v1216_v49 = vmul.f32 %v2036_v8, %v1172_v20  ;;  %v1223_v2 = vmul.f32 %v2036_v8, %v1179_v24 }
 0x45d   : > { %v1161_v28 = vmax.f32 %v1095_v27, 0.0  ;;  %v1167_v55 = vmax.f32 %v1113_v43, 0.0 }
 0x45e   : > { %1242 = vst.msk [vmem:[%s2200_s5 + $0x78] sm:$0xff] %vm1226_vm1, %v1216_v49 }
 0x45f   : > { %v1130_v61 = vpop.f32.mrf.mxu2  ;;  %1249 = vst.msk [vmem:[%s2200_s5 + $0xb0] sm:$0xff] %vm1226_vm1, %v1223_v2  ;;  %v1205_v3 = vmul.f32 %v2036_v8, %v1161_v28  ;;  %v1211_v30 = vmul.f32 %v2036_v8, %v1167_v55  ;;  %v1151_v32 = vpop.f32.mrf.mxu3 }
 0x460   : > { %v1131_v34 = vadd.f32 %v2032_v25, %v1130_v61  ;;  %v1152_v40 = vadd.f32 %v2032_v25, %v1151_v32 }
 0x461   : > { %1231 = vst.msk [vmem:[%s2200_s5 + $0x20] sm:$0xff] %vm1226_vm1, %v1205_v3 }
 0x462   : > { %v1173_v44 = vmax.f32 %v1131_v34, 0.0  ;;  %1237 = vst.msk [vmem:[%s2200_s5 + $0x50] sm:$0xff] %vm1226_vm1, %v1211_v30  ;;  %v1180_v45 = vmax.f32 %v1152_v40, 0.0  ;;  %v1097_v15 = vpop.f32.mrf.mxu0  ;;  %v1115_v21 = vpop.f32.mrf.mxu1 }
 0x463   : > { %v1098_v52 = vadd.f32 %v2032_v25, %v1097_v15  ;;  %v1116_v53 = vadd.f32 %v2032_v25, %v1115_v21 }
 0x464   : > { %v1217_v9 = vmul.f32 %v2036_v8, %v1173_v44  ;;  %v1224_v56 = vmul.f32 %v2036_v8, %v1180_v45 }
 0x465   : > { %v1162_v57 = vmax.f32 %v1098_v52, 0.0  ;;  %v1168_v36 = vmax.f32 %v1116_v53, 0.0 }
 0x466   : > { %1243 = vst.msk [vmem:[%s2200_s5 + $0x80] sm:$0xff] %vm1226_vm1, %v1217_v9 }
 0x467   : > { %v1133_v38 = vpop.f32.mrf.mxu2  ;;  %1250 = vst.msk [vmem:[%s2200_s5 + $0xb8] sm:$0xff] %vm1226_vm1, %v1224_v56  ;;  %v1206_v46 = vmul.f32 %v2036_v8, %v1162_v57  ;;  %v1212_v50 = vmul.f32 %v2036_v8, %v1168_v36  ;;  %v1154_v59 = vpop.f32.mrf.mxu3 }
 0x468   : > { %v1134_v1 = vadd.f32 %v2032_v25, %v1133_v38  ;;  %v1155_v4 = vadd.f32 %v2032_v25, %v1154_v59 }
 0x469   : > { %1232 = vst.msk [vmem:[%s2200_s5 + $0x28] sm:$0xff] %vm1226_vm1, %v1206_v46 }
 0x46a   : > { %v1174_v29 = vmax.f32 %v1134_v1, 0.0  ;;  %1238 = vst.msk [vmem:[%s2200_s5 + $0x58] sm:$0xff] %vm1226_vm1, %v1212_v50  ;;  %v1181_v5 = vmax.f32 %v1155_v4, 0.0 }
 0x46c   : > { %v1218_v31 = vmul.f32 %v2036_v8, %v1174_v29  ;;  %v1225_v6 = vmul.f32 %v2036_v8, %v1181_v5 }
 0x46e   : > { %1244 = vst.msk [vmem:[%s2200_s5 + $0x88] sm:$0xff] %vm1226_vm1, %v1218_v31 }
 0x46f   : > { %v1136_v7 = vpop.f32.mrf.mxu2  ;;  %1251 = vst.msk [vmem:[%s2200_s5 + $0xc0] sm:$0xff] %vm1226_vm1, %v1225_v6 }
 0x470   : > { %v1137_v47 = vadd.f32 %v2032_v25, %v1136_v7 }
 0x472   : > { %v1175_v0 = vmax.f32 %v1137_v47, 0.0 }
 0x474   : > { %v1219_v51 = vmul.f32 %v2036_v8, %v1175_v0 }
 0x476   : > { %1245 = vst.msk [vmem:[%s2200_s5 + $0x90] sm:$0xff] %vm1226_vm1, %v1219_v51 }
 0x477 PF: > { %s15_s20 = sadd.s32 1, %s1540_s20   ;;  %s2201_s18 = smov %s1536_s19 }
 0x478   : > { %p12_p8 = scmp.ge.s32.totalorder %s15_s20, 5   ;;  %s2202_s19 = smov %s2204_s21 }
 0x47a   :  { %14 = sbr.rel (!%p12_p8) target bundleno = 2 (0x2), region = 93 }

</bundles_post_ra>
